<compile_context>
chip_gen: v6e
topology: v6e:2x2x1
jax: 0.10.0
libtpu: 0.0.40
codegen_flags: <defaults>
</compile_context>

<pallas_src>
import functools

import jax
import jax.numpy as jnp
from jax.experimental import pallas as pl
from jax.experimental.pallas import tpu as pltpu

EPS = 1e-5


def _gating_kernel(x_ref, w_ref, o_ref, sum_ref, ssq_ref, *cache, inv_s, use_cache):
    """One grid step of Conv(1x1x1) -> InstanceNorm -> ReLU for one (sample, Cout-group).

    Grid: (N, G, 2, nk).  pass p==0: accumulate per-channel stats (and stash y),
                          pass p==1: normalize + ReLU + write.
    x_ref: (Cin, tS)   w_ref: (tC, Cin)   o_ref: (tC, tS)
    sum_ref / ssq_ref: (tC, 1) f32 scratch, reused as mean / rstd after the finalize.
    cache: optional (nk, tC, tS) f32 VMEM cache of the conv output.
    """
    p = pl.program_id(2)           # 0: stats pass, 1: normalize pass
    k = pl.program_id(3)           # S-tile index
    nk = pl.num_programs(3)

    @pl.when(p == 0)
    def _stats_pass():
        # 1x1x1 conv == per-position channel matmul: (tC, Cin) @ (Cin, tS) on the MXU,
        # native-dtype operands, f32 accumulation, spatial positions on the lane axis.
        y = jnp.dot(w_ref[...], x_ref[...], preferred_element_type=jnp.float32)

        @pl.when(k == 0)
        def _init():
            sum_ref[...] = jnp.zeros_like(sum_ref)
            ssq_ref[...] = jnp.zeros_like(ssq_ref)

        sum_ref[...] += jnp.sum(y, axis=1, keepdims=True)
        ssq_ref[...] += jnp.sum(y * y, axis=1, keepdims=True)

        if use_cache:
            cache[0][k] = y        # stash: pass 1 needs no x re-read and no duplicate matmul

        @pl.when(k == nk - 1)
        def _finalize_stats():
            mean = sum_ref[...] * inv_s
            # Biased variance (InstanceNorm).  E[y^2]-mean^2 in f32 with a >=0 clamp;
            # adequate for this module's magnitudes (see review note on cancellation).
            var = ssq_ref[...] * inv_s - mean * mean
            sum_ref[...] = mean                                         # reuse: sum -> mean
            ssq_ref[...] = jax.lax.rsqrt(jnp.maximum(var, 0.0) + EPS)   # reuse: ssq -> rstd

    @pl.when(p == 1)
    def _normalize_pass():
        if use_cache:
            y = cache[0][k]
        else:
            y = jnp.dot(w_ref[...], x_ref[...], preferred_element_type=jnp.float32)
        # (A per-channel conv bias would be cancelled exactly here by the mean subtraction.)
        o_ref[...] = jnp.maximum((y - sum_ref[...]) * ssq_ref[...], 0.0).astype(o_ref.dtype)


def _vmem_budget_bytes():
    """Usable per-core VMEM budget.  Generation-aware; conservative (v7x) fallback."""
    cap = 64 * 1024 * 1024
    try:
        info = pltpu.get_tpu_info()
        cap = int(getattr(info, "vmem_capacity_bytes", cap)) or cap
    except Exception:
        pass
    # Never request more than 3/4 of physical VMEM; cap at 96 MiB (v5e/v6e have 128 MiB).
    return min(cap * 3 // 4, 96 * 1024 * 1024)


def _footprint(tS, Cin, tC, in_item, out_item):
    """Per-core VMEM bytes of the pipeline, excluding the optional y-cache."""
    return (2 * Cin * tS * in_item        # double-buffered x tile
            + 2 * tC * tS * out_item      # double-buffered output tile
            + 2 * tC * Cin * 4            # (tC, Cin) weight (default double-buffered)
            + 2 * tC * 128 * 4            # sum/ssq scratch (lane-padded)
            + (1 << 20))                  # slack for Mosaic internal scratch


def _plan(S, Cin, tC, in_item, out_item, budget, tile_target_bytes):
    """Pick the spatial tile tS, the padded spatial extent and the tile count."""
    # Whole-S resident tile when the x slab is small (typical for a gating signal):
    # no padding; pipelining still overlaps across the pass/sample/group grid axes.
    if (Cin * S * in_item <= 2 * tile_target_bytes
            and _footprint(S, Cin, tC, in_item, out_item) <= budget):
        return S, S, 1

    # Byte-target tile: each grid step should move ~tile_target_bytes of x so the
    # ~0.35us per-grid-step overhead is amortized even for small channel counts.
    tgt = (tile_target_bytes // max(1, Cin * in_item)) // 128 * 128
    tgt = int(max(128, min(tgt, 8192)))

    # Prefer an exact 128-multiple divisor of S near the target (avoids padding work).
    tS = 0
    t = tgt
    while t >= 128:
        if S % t == 0:
            tS = t
            break
        t -= 128
    if tS < max(128, tgt // 2):
        tS = tgt                   # no good divisor: pad S up to a multiple of tS instead

    # Shrink if even the un-cached pipeline would not fit the per-core budget.
    while tS > 128 and _footprint(tS, Cin, tC, in_item, out_item) > budget:
        tS = max(128, (tS // 2) // 128 * 128)

    s_pad = -(-S // tS) * tS
    return tS, s_pad, s_pad // tS


def unet_grid_gating_signal3(x_ncdhw, weight_oi, bias=None, *,
                             tile_target_bytes=1 << 20,
                             use_cache=None, cout_groups=None):
    """Conv3d(1x1x1) -> InstanceNorm3d(affine=False) -> ReLU.

    x_ncdhw:   (N, Cin, D, H, W)
    weight_oi: (Cout, Cin)  -- PyTorch Conv3d weight with the 1x1x1 kernel dims squeezed.
    bias:      ignored -- a per-channel conv bias is cancelled exactly by the InstanceNorm
               mean subtraction (variance unchanged), so it is dropped from the kernel.
    """
    del bias  # mathematical no-op after InstanceNorm(affine=False)

    N, Cin, D, H, W = x_ncdhw.shape
    Cout = weight_oi.shape[0]
    S = D * H * W

    # --- Cout-group axis: second "parallel" grid dim so both v7x TensorCores are populated
    # when N < 2.  Per-(n, c) stats are independent, so splitting Cout needs no cross-core
    # reduction; cost is one extra x read per group (only enabled when Cin <= Cout).
    if cout_groups is None:
        cout_groups = 2 if (N < 2 and Cout % 16 == 0 and Cin <= Cout) else 1
    G = max(1, int(cout_groups))
    if Cout % G != 0 or (G > 1 and (Cout // G) % 8 != 0):
        G = 1
    tC = Cout // G

    in_item = jnp.dtype(x_ncdhw.dtype).itemsize
    out_item = in_item
    budget = _vmem_budget_bytes()

    tS, S_pad, nk = _plan(S, Cin, tC, in_item, out_item, budget, tile_target_bytes)

    base_bytes = _footprint(tS, Cin, tC, in_item, out_item)
    cache_bytes = nk * tC * tS * 4
    cache_fits = (base_bytes + cache_bytes) <= budget
    if use_cache is None:
        use_cache = cache_fits
    use_cache = bool(use_cache) and cache_fits

    vmem_need = base_bytes + (cache_bytes if use_cache else 0)
    vmem_limit = int(min(budget, max(vmem_need + (4 << 20), 16 << 20)))

    # Free reshape: NCDHW stays channel-major, spatial flattened onto the lane axis.
    x = x_ncdhw.reshape(N, Cin, S)
    if S_pad != S:
        # Zero padding is exact: padded columns give y == 0 (bias dropped), contributing
        # nothing to sum/ssq while inv_s stays 1/S_real; padded output columns are sliced off.
        x = jnp.pad(x, ((0, 0), (0, 0), (0, S_pad - S)))

    kernel = functools.partial(_gating_kernel, inv_s=1.0 / S, use_cache=use_cache)

    if use_cache:
        # Pin the x block on the last pass-0 tile during p==1 so no new x DMAs are issued
        # (pass 1 reads the conv output from the VMEM y-cache).
        x_index = lambda n, g, p, k: (n, 0, k * (1 - p) + (nk - 1) * p)
    else:
        x_index = lambda n, g, p, k: (n, 0, k)

    scratch = [
        pltpu.VMEM((tC, 1), jnp.float32),   # running sum   -> mean after finalize
        pltpu.VMEM((tC, 1), jnp.float32),   # running sumsq -> rstd after finalize
    ]
    if use_cache:
        scratch.append(pltpu.VMEM((nk, tC, tS), jnp.float32))   # per-(n, g) conv-output cache

    out = pl.pallas_call(
        kernel,
        out_shape=jax.ShapeDtypeStruct((N, Cout, S_pad), x.dtype),
        grid_spec=pltpu.PrefetchScalarGridSpec(
            num_scalar_prefetch=0,
            grid=(N, G, 2, nk),   # samples x Cout-groups x {stats, normalize} x S-tiles
            in_specs=[
                # Per-sample activation tile, channel-major, spatial on lanes (lane-dense).
                pl.BlockSpec((None, Cin, tS), x_index),
                # Per-group (tC, Cin) weight slice, resident across the inner axes.
                pl.BlockSpec((tC, Cin), lambda n, g, p, k: (g, 0)),
            ],
            # Output block index pinned at tile 0 during the stats pass (p==0) so the
            # never-written buffer is not flushed; pass 1 walks and writes each tile once.
            out_specs=pl.BlockSpec((None, tC, tS), lambda n, g, p, k: (n, g, k * p)),
            scratch_shapes=scratch,
        ),
        compiler_params=pltpu.CompilerParams(
            dimension_semantics=("parallel", "parallel", "arbitrary", "arbitrary"),
            vmem_limit_bytes=vmem_limit,
        ),
    )(x, weight_oi)

    if S_pad != S:
        out = out[:, :, :S]
    return out.reshape(N, Cout, D, H, W)


def _reference(x_ncdhw, weight_oi, bias):
    """Pure-JAX reference: Conv3d(1x1x1, +bias) -> InstanceNorm3d -> ReLU (bias included to
    demonstrate it is cancelled by the norm)."""
    N, Cin, D, H, W = x_ncdhw.shape
    Cout = weight_oi.shape[0]
    S = D * H * W
    x = x_ncdhw.reshape(N, Cin, S).astype(jnp.float32)
    y = jnp.einsum("oi,nis->nos", weight_oi.astype(jnp.float32), x)
    y = y + bias.astype(jnp.float32)[None, :, None]
    mean = jnp.mean(y, axis=2, keepdims=True)
    var = jnp.mean((y - mean) ** 2, axis=2, keepdims=True)
    y = (y - mean) / jnp.sqrt(var + EPS)
    y = jnp.maximum(y, 0.0)
    return y.reshape(N, Cout, D, H, W)


if __name__ == "__main__":
    key = jax.random.PRNGKey(0)
    k_x, k_w, k_b = jax.random.split(key, 3)

    # Gating signals run at a coarse U-Net resolution: small spatial, modest channels.
    Cin, Cout = 8, 16

    # Kaiming-normal (fan_in, a=0) for the 1x1x1 conv weight: std = sqrt(2 / fan_in).
    w_std = (2.0 / Cin) ** 0.5
    weight = jax.random.normal(k_w, (Cout, Cin), dtype=jnp.float32) * w_std
    # PyTorch conv bias default init; mathematically cancelled by the InstanceNorm.
    b_bound = 1.0 / (Cin ** 0.5)
    bias = jax.random.uniform(k_b, (Cout,), dtype=jnp.float32, minval=-b_bound, maxval=b_bound)

    cases = [
        # (name, N, (D, H, W), wrapper kwargs)
        ("whole_S_cached",          2, (16, 16, 8), {}),                                  # nk=1, y-cache
        ("cout_groups_megacore",    1, (16, 16, 8), {}),                                  # N<2 -> G=2 (v7x)
        ("tiled_padded_cached",     2, (12, 10, 9), dict(tile_target_bytes=4 * 1024)),    # nk>1 + padding
        ("tiled_padded_recompute",  2, (12, 10, 9), dict(tile_target_bytes=4 * 1024,
                                                         use_cache=False)),               # fallback path
    ]
    keys = jax.random.split(k_x, len(cases))
    for (name, N, (D, H, W), kw), kx in zip(cases, keys):
        x = jax.random.normal(kx, (N, Cin, D, H, W), dtype=jnp.float32)
        out = jax.block_until_ready(unet_grid_gating_signal3(x, weight, bias, **kw))
        ref = _reference(x, weight, bias)
        assert out.shape == (N, Cout, D, H, W), (name, out.shape)
        err = float(jnp.max(jnp.abs(out - ref)))
        assert jnp.allclose(out, ref, atol=1e-4, rtol=1e-4), (name, err)

    print("KERNEL_OK")
</pallas_src>

<mosaic_0001>
module attributes {stable_mosaic.version = 11 : i64} {
  func.func @_gating_kernel(%arg0: i32, %arg1: i32, %arg2: i32, %arg3: i32, %arg4: memref<1x8x2048xf32, #tpu.memory_space<vmem>>, %arg5: memref<16x8xf32, #tpu.memory_space<vmem>>, %arg6: memref<1x16x2048xf32, #tpu.memory_space<vmem>>, %arg7: memref<16x1xf32, #tpu.memory_space<vmem>>, %arg8: memref<16x1xf32, #tpu.memory_space<vmem>>, %arg9: memref<1x16x2048xf32, #tpu.memory_space<vmem>>) attributes {dimension_semantics = [#tpu.dimension_semantics<parallel>, #tpu.dimension_semantics<parallel>, #tpu.dimension_semantics<arbitrary>, #tpu.dimension_semantics<arbitrary>], iteration_bounds = array<i64: 2, 1, 2, 1>, scalar_prefetch = 0 : i64, scratch_operands = 3 : i64, tpu.core_type = #tpu.core_type<tc>, window_params = [{transform_indices = @transform_0, window_bounds = array<i64: 1, 8, 2048>}, {transform_indices = @transform_1, window_bounds = array<i64: 16, 8>}, {transform_indices = @transform_2, window_bounds = array<i64: 1, 16, 2048>}]} {
    %c0_i32 = arith.constant 0 : i32
    %0 = arith.cmpi eq, %arg2, %c0_i32 : i32
    %1 = arith.extui %0 : i1 to i32
    %c0_i32_0 = arith.constant 0 : i32
    %2 = arith.cmpi ne, %1, %c0_i32_0 : i32
    scf.if %2 {
      %c0 = arith.constant 0 : index
      %c0_2 = arith.constant 0 : index
      %6 = vector.load %arg5[%c0, %c0_2] : memref<16x8xf32, #tpu.memory_space<vmem>>, vector<16x8xf32>
      %c0_3 = arith.constant 0 : index
      %c0_4 = arith.constant 0 : index
      %c0_5 = arith.constant 0 : index
      %7 = vector.load %arg4[%c0_3, %c0_4, %c0_5] : memref<1x8x2048xf32, #tpu.memory_space<vmem>>, vector<1x8x2048xf32>
      %8 = vector.shape_cast %7 : vector<1x8x2048xf32> to vector<8x2048xf32>
      %cst = arith.constant dense<0.000000e+00> : vector<16x2048xf32>
      %9 = tpu.matmul %6, %8, %cst {dimension_numbers = #tpu.dot_dimension_numbers<[1], [0], [0], [1], [0, 0, 1, 1], [], []>} : vector<16x8xf32>, vector<8x2048xf32>, vector<16x2048xf32> -> vector<16x2048xf32>
      %c0_i32_6 = arith.constant 0 : i32
      %10 = arith.cmpi eq, %arg3, %c0_i32_6 : i32
      %11 = arith.extui %10 : i1 to i32
      %c0_i32_7 = arith.constant 0 : i32
      %12 = arith.cmpi ne, %11, %c0_i32_7 : i32
      scf.if %12 {
        %cst_22 = arith.constant 0.000000e+00 : f32
        %31 = vector.broadcast %cst_22 : f32 to vector<16x1xf32>
        %c0_23 = arith.constant 0 : index
        %c0_24 = arith.constant 0 : index
        %32 = vector.load %arg7[%c0_23, %c0_24] : memref<16x1xf32, #tpu.memory_space<vmem>>, vector<16x1xf32>
        tpu.vector_store %arg7[%c0_23, %c0_24], %31 {strides = array<i32>} : memref<16x1xf32, #tpu.memory_space<vmem>>, vector<16x1xf32>,
        %cst_25 = arith.constant 0.000000e+00 : f32
        %33 = vector.broadcast %cst_25 : f32 to vector<16x1xf32>
        %c0_26 = arith.constant 0 : index
        %c0_27 = arith.constant 0 : index
        %34 = vector.load %arg8[%c0_26, %c0_27] : memref<16x1xf32, #tpu.memory_space<vmem>>, vector<16x1xf32>
        tpu.vector_store %arg8[%c0_26, %c0_27], %33 {strides = array<i32>} : memref<16x1xf32, #tpu.memory_space<vmem>>, vector<16x1xf32>,
      } else {
      }
      %c0_8 = arith.constant 0 : index
      %c0_9 = arith.constant 0 : index
      %13 = vector.load %arg7[%c0_8, %c0_9] : memref<16x1xf32, #tpu.memory_space<vmem>>, vector<16x1xf32>
      %cst_10 = arith.constant dense<0.000000e+00> : vector<16xf32>
      %14 = vector.multi_reduction <add>, %9, %cst_10 [1] : vector<16x2048xf32> to vector<16xf32>
      %15 = vector.shape_cast %14 : vector<16xf32> to vector<16x1xf32>
      %16 = arith.addf %13, %15 : vector<16x1xf32>
      %c0_11 = arith.constant 0 : index
      %c0_12 = arith.constant 0 : index
      %17 = vector.load %arg7[%c0_11, %c0_12] : memref<16x1xf32, #tpu.memory_space<vmem>>, vector<16x1xf32>
      tpu.vector_store %arg7[%c0_11, %c0_12], %16 {strides = array<i32>} : memref<16x1xf32, #tpu.memory_space<vmem>>, vector<16x1xf32>,
      %c0_13 = arith.constant 0 : index
      %c0_14 = arith.constant 0 : index
      %18 = vector.load %arg8[%c0_13, %c0_14] : memref<16x1xf32, #tpu.memory_space<vmem>>, vector<16x1xf32>
      %19 = arith.mulf %9, %9 : vector<16x2048xf32>
      %cst_15 = arith.constant dense<0.000000e+00> : vector<16xf32>
      %20 = vector.multi_reduction <add>, %19, %cst_15 [1] : vector<16x2048xf32> to vector<16xf32>
      %21 = vector.shape_cast %20 : vector<16xf32> to vector<16x1xf32>
      %22 = arith.addf %18, %21 : vector<16x1xf32>
      %c0_16 = arith.constant 0 : index
      %c0_17 = arith.constant 0 : index
      %23 = vector.load %arg8[%c0_16, %c0_17] : memref<16x1xf32, #tpu.memory_space<vmem>>, vector<16x1xf32>
      tpu.vector_store %arg8[%c0_16, %c0_17], %22 {strides = array<i32>} : memref<16x1xf32, #tpu.memory_space<vmem>>, vector<16x1xf32>,
      %24 = arith.index_cast %arg3 : i32 to index
      %c0_18 = arith.constant 0 : index
      %c0_19 = arith.constant 0 : index
      %25 = vector.load %arg9[%24, %c0_18, %c0_19] : memref<1x16x2048xf32, #tpu.memory_space<vmem>>, vector<1x16x2048xf32>
      %26 = vector.shape_cast %25 : vector<1x16x2048xf32> to vector<16x2048xf32>
      %27 = vector.shape_cast %9 : vector<16x2048xf32> to vector<1x16x2048xf32>
      tpu.vector_store %arg9[%24, %c0_18, %c0_19], %27 {strides = array<i32>} : memref<1x16x2048xf32, #tpu.memory_space<vmem>>, vector<1x16x2048xf32>,
      %c0_i32_20 = arith.constant 0 : i32
      %28 = arith.cmpi eq, %arg3, %c0_i32_20 : i32
      %29 = arith.extui %28 : i1 to i32
      %c0_i32_21 = arith.constant 0 : i32
      %30 = arith.cmpi ne, %29, %c0_i32_21 : i32
      scf.if %30 {
        %c0_22 = arith.constant 0 : index
        %c0_23 = arith.constant 0 : index
        %31 = vector.load %arg7[%c0_22, %c0_23] : memref<16x1xf32, #tpu.memory_space<vmem>>, vector<16x1xf32>
        %cst_24 = arith.constant 4.8828125E-4 : f32
        %32 = vector.broadcast %cst_24 : f32 to vector<16x1xf32>
        %33 = arith.mulf %31, %32 : vector<16x1xf32>
        %c0_25 = arith.constant 0 : index
        %c0_26 = arith.constant 0 : index
        %34 = vector.load %arg8[%c0_25, %c0_26] : memref<16x1xf32, #tpu.memory_space<vmem>>, vector<16x1xf32>
        %cst_27 = arith.constant 4.8828125E-4 : f32
        %35 = vector.broadcast %cst_27 : f32 to vector<16x1xf32>
        %36 = arith.mulf %34, %35 : vector<16x1xf32>
        %37 = arith.mulf %33, %33 : vector<16x1xf32>
        %38 = arith.subf %36, %37 : vector<16x1xf32>
        %c0_28 = arith.constant 0 : index
        %c0_29 = arith.constant 0 : index
        %39 = vector.load %arg7[%c0_28, %c0_29] : memref<16x1xf32, #tpu.memory_space<vmem>>, vector<16x1xf32>
        tpu.vector_store %arg7[%c0_28, %c0_29], %33 {strides = array<i32>} : memref<16x1xf32, #tpu.memory_space<vmem>>, vector<16x1xf32>,
        %cst_30 = arith.constant 0.000000e+00 : f32
        %40 = vector.broadcast %cst_30 : f32 to vector<16x1xf32>
        %41 = arith.maximumf %38, %40 : vector<16x1xf32>
        %cst_31 = arith.constant 9.99999974E-6 : f32
        %42 = vector.broadcast %cst_31 : f32 to vector<16x1xf32>
        %43 = arith.addf %41, %42 : vector<16x1xf32>
        %44 = math.rsqrt %43 : vector<16x1xf32>
        %c0_32 = arith.constant 0 : index
        %c0_33 = arith.constant 0 : index
        %45 = vector.load %arg8[%c0_32, %c0_33] : memref<16x1xf32, #tpu.memory_space<vmem>>, vector<16x1xf32>
        tpu.vector_store %arg8[%c0_32, %c0_33], %44 {strides = array<i32>} : memref<16x1xf32, #tpu.memory_space<vmem>>, vector<16x1xf32>,
      } else {
      }
    } else {
    }
    %c1_i32 = arith.constant 1 : i32
    %3 = arith.cmpi eq, %arg2, %c1_i32 : i32
    %4 = arith.extui %3 : i1 to i32
    %c0_i32_1 = arith.constant 0 : i32
    %5 = arith.cmpi ne, %4, %c0_i32_1 : i32
    scf.if %5 {
      %6 = arith.index_cast %arg3 : i32 to index
      %c0 = arith.constant 0 : index
      %c0_2 = arith.constant 0 : index
      %7 = vector.load %arg9[%6, %c0, %c0_2] : memref<1x16x2048xf32, #tpu.memory_space<vmem>>, vector<1x16x2048xf32>
      %8 = vector.shape_cast %7 : vector<1x16x2048xf32> to vector<16x2048xf32>
      %c0_3 = arith.constant 0 : index
      %c0_4 = arith.constant 0 : index
      %9 = vector.load %arg7[%c0_3, %c0_4] : memref<16x1xf32, #tpu.memory_space<vmem>>, vector<16x1xf32>
      %10 = vector.broadcast %9 : vector<16x1xf32> to vector<16x2048xf32>
      %11 = arith.subf %8, %10 : vector<16x2048xf32>
      %c0_5 = arith.constant 0 : index
      %c0_6 = arith.constant 0 : index
      %12 = vector.load %arg8[%c0_5, %c0_6] : memref<16x1xf32, #tpu.memory_space<vmem>>, vector<16x1xf32>
      %13 = vector.broadcast %12 : vector<16x1xf32> to vector<16x2048xf32>
      %14 = arith.mulf %11, %13 : vector<16x2048xf32>
      %cst = arith.constant 0.000000e+00 : f32
      %15 = vector.broadcast %cst : f32 to vector<16x2048xf32>
      %16 = arith.maximumf %14, %15 : vector<16x2048xf32>
      %c0_7 = arith.constant 0 : index
      %c0_8 = arith.constant 0 : index
      %c0_9 = arith.constant 0 : index
      %17 = vector.load %arg6[%c0_7, %c0_8, %c0_9] : memref<1x16x2048xf32, #tpu.memory_space<vmem>>, vector<1x16x2048xf32>
      %18 = vector.shape_cast %17 : vector<1x16x2048xf32> to vector<16x2048xf32>
      %19 = vector.shape_cast %16 : vector<16x2048xf32> to vector<1x16x2048xf32>
      tpu.vector_store %arg6[%c0_7, %c0_8, %c0_9], %19 {strides = array<i32>} : memref<1x16x2048xf32, #tpu.memory_space<vmem>>, vector<1x16x2048xf32>,
    } else {
    }
    return
  }
  func.func @transform_0(%arg0: i32, %arg1: i32, %arg2: i32, %arg3: i32) -> (i32, i32, i32) {
    %c1_i32 = arith.constant 1 : i32
    %0 = arith.subi %c1_i32, %arg2 : i32
    %1 = arith.muli %arg3, %0 : i32
    %c0_i32 = arith.constant 0 : i32
    %2 = arith.muli %c0_i32, %arg2 : i32
    %3 = arith.addi %1, %2 : i32
    %c0_i32_0 = arith.constant 0 : i32
    %c0_i32_1 = arith.constant 0 : i32
    return %arg0, %c0_i32_0, %3 : i32, i32, i32
  }
  func.func @transform_1(%arg0: i32, %arg1: i32, %arg2: i32, %arg3: i32) -> (i32, i32) {
    %c0_i32 = arith.constant 0 : i32
    %c0_i32_0 = arith.constant 0 : i32
    return %arg1, %c0_i32 : i32, i32
  }
  func.func @transform_2(%arg0: i32, %arg1: i32, %arg2: i32, %arg3: i32) -> (i32, i32, i32) {
    %0 = arith.muli %arg3, %arg2 : i32
    %c0_i32 = arith.constant 0 : i32
    return %arg0, %arg1, %0 : i32, i32, i32
  }
}

</mosaic_0001>

<bundles_post_ra>
// kernel: tpu_custom_call.1
= control target key start
LH: loop header
LB: loop body
LE: loop exit
PB: predicated region body
PF: predicated region fallthrough
CT: control target
= control target key end

     0   :  { %7 = vsyncpa [#allocation6], 0  ;;  %s1971_s0 = inlined_call_operand.hbm [shape: f32[2,8,2048], index: 0, kind: input, shape index: {}]   ;;  %s1972_s1 = inlined_call_operand.vmem [shape: f32[16,8], index: 1, kind: input, shape index: {}]   ;;  %s1973_s2 = inlined_call_operand.hbm [shape: f32[2,16,2048], index: 2, kind: output, shape index: {}]  }
   0x1   :  { %9 = vsyncpa [#allocation6 + $0x1], 0 }
   0x2   :  { %10 = vsyncpa [#allocation7], 0 }
   0x3   :  { %12 = vsyncpa [#allocation7 + $0x1], 0  ;;  %s1656_s9 = smov 0   ;;  %s1658_s10 = smov 0  }
   0x4   :  { %s1660_s11 = smov 0   ;;  %s1662_s12 = smov 0  }
   0x5   :  { %s1664_s13 = smov 0   ;;  %s1666_s14 = smov 0  }
   0x6   :  { %s1668_s15 = smov 0   ;;  %s1670_s16 = smov 0  }
   0x7 LB: > { %s1385_s17 = sadd.s32 4294967295, %s1633_s16   ;;  %s1386_s18 = sadd.s32 4294967294, %s1633_s16   ;;  %s1633_s16 = sphi %s1670_s16, %s18_s16   ;;  %s1629_s15 = sphi %s1668_s15, %s1986_s15   ;;  %s1625_s14 = sphi %s1666_s14, %s1985_s14   ;;  %s1621_s13 = sphi %s1664_s13, %s1984_s13   ;;  %s1617_s12 = sphi %s1662_s12, %s1983_s12   ;;  %s1613_s11 = sphi %s1660_s11, %s1982_s11   ;;  %s1609_s10 = sphi %s1658_s10, %s1981_s10   ;;  %s1605_s9 = sphi %s1656_s9, %s1980_s9  }
   0x8   : > { %s36_s19 = sadd.s32 1, %s1625_s14  ;;  %s44_s20 = sadd.s32 1, %s1629_s15 }
   0x9   : > { %p38_p0 = scmp.ge.s32.totalorder %s36_s19, 2  ;;  %s57_s21 = sadd.s32 1, %s1613_s11 }
   0xa   : > { %p64_p1 = scmp.ne.s32.totalorder %s1613_s11, %s1609_s10  ;;  %p65_p2 = scmp.eq.s32.totalorder %s1633_s16, 0 }
   0xb   : > { %s1988_s19 = smov (%p38_p0, %s36_s19), 0  ;;  %s1990_s20 = smov (!%p38_p0, %s44_s20), %s1629_s15 }
   0xc   : > { %p1707_p3 = por %p65_p2, %p64_p1  ;;  %p70_p4 = scmp.ne.s32.totalorder %s1609_s10, %s1605_s9 }
   0xd   : > { %p46_p5 = scmp.ge.s32.totalorder %s1990_s20, 2  ;;  %p71_p6 = scmp.eq.s32.totalorder %s1385_s17, 0 }
   0xe   : > { %p126_p7 = scmp.eq.s32.totalorder %s1385_s17, 3  ;;  %p132_p8 = scmp.eq.s32.totalorder %s1386_s18, 3 }
   0xf   : > { %s1992_s20 = smov (%p46_p5, %s1990_s20), 0  ;;  %p1715_p9 = por %p71_p6, %p70_p4 }
  0x10   : > { %p1719_p10 = por %p126_p7, %p64_p1  ;;  %s52_s25 = ssub.s32 %s1629_s15, %s1992_s20 }
  0x11   : > { %p1725_p11 = por %p132_p8, %p70_p4  ;;  %p55_p12 = scmp.eq.s32.totalorder %s52_s25, 0 }
  0x12   : > { %p1433_p13 = scmp.lt.s32.totalorder %s1633_s16, 4  ;;  %s161_s27 = sand.u32 1, %s1613_s11  }
  0x13   : > { %s1977_s26 = scalar_select %p1725_p11, 1, 0 }
  0x14   : > { %s1732_s28 = scalar_select %p55_p12, %s1613_s11, %s57_s21  }
  0x15   : > { %s1390_s29 = sshll.u32 %s161_s27, 7  ;;  %s1419_s30 = sshll.u32 %s1629_s15, 11 }
  0x16   : > { %s175_s5 = scalar_lea.hbm %s1971_s0, %s1419_s30  ;;  %s165_s6 = scalar_lea.vmem [#allocation5], %s1390_s29 }
  0x17   : > { %s177_s7 = sshll.u32 %s165_s6, 4  ;;  %p1740_p0 = pnand %p1433_p13, %p1707_p3  ;;  %s178_s7 = int_to_ptr.vmem [resolvable:$true] %s177_s7 }
  0x18   : > { %p1393_p1 = scmp.ge.s32.totalorder %s1633_s16, 1  ;;  %p182_p2 = scmp.lt.s32.totalorder %s1633_s16, 5 }
  0x19   : > { %s162_s17 = scalar_lea.sflag [#allocation6], %s161_s27  ;;  %p1511_p4 = pneg %p1740_p0 }
  0x1a   : > { %s1522_s18 = scalar_lea.vmem %s178_s7, 2048  ;;  %s1635_s21 = smov [#allocation5]  }
  0x1b   : > { %p1523_p5 = scmp.ne.s32.totalorder %s178_s7, %s1522_s18  ;;  %s1527_s25 = sshll.u32 %s1635_s21, 4  ;;  %s1528_s25 = int_to_ptr.vmem [resolvable:$false] %s1527_s25 }
  0x1c   : > { %s1529_s29 = scalar_lea.vmem %s1528_s25, 4096  ;;  %p1530_p8 = scmp.lt.s32.totalorder %s178_s7, %s1528_s25 }
  0x1d   : > { %p1525_p6 = pnand %p1523_p5, %p1511_p4  ;;  %p1531_p12 = scmp.lt.s32.totalorder %s1529_s29, %s1522_s18 }
  0x1f   : > { %p1526_p7 = pneg %p1525_p6  ;;  %p1532_p3 = por %p1531_p12, %p1530_p8 }
  0x21   : > { %p1533_p13 = pnand %p1532_p3, %p1526_p7 }
  0x23   : > { %1536 = shalt.err (!%p1533_p13)
}
  0x24   : > { %1428 = dma.hbm_to_vmem [thread:$0]  (!%p1740_p0), %s175_s5, 2048, %s178_s7, %s162_s17  }
  0x25   : > { %p183_p11 = pnand %p1393_p1, %p182_p2 }
  0x26   : > { %s1755_s22 = sand.u32 (!%p183_p11), 1, %s1609_s10  }
  0x27   : > { %186 = sbr.rel (%p183_p11) target bundleno = 646 (0x286), region = 28  ;;  %s1394_s27 = sshll.u32 (!%p183_p11), %s1755_s22, 7 }
  0x28   : > { %s189_s30 = scalar_lea.sflag (!%p183_p11), [#allocation6], %s1755_s22  ;;  %s1759_s3 = scalar_lea.vmem (!%p183_p11), [#allocation5], %s1394_s27 }
  0x2c   : > { %1596 = dma.done.wait (%p1715_p9), %s189_s30, 2048  }
  0x2d   : > { %1598 = vsyncadd (%p1715_p9), %s189_s30, 4294965248  ;;  %s1395_s4 = sshll.u32 %s1755_s22, 8  ;;  %p1396_p11 = scmp.ne.s32.totalorder %s1617_s12, 0 }
  0x2e   : > { %s1766_s5 = scalar_lea.vmem [#allocation8], %s1395_s4 }
  0x2f   : > { %233 = sbr.rel (%p1396_p11) target bundleno = 458 (0x1ca), region = 36 }
  0x34   : > { %v237_v0 = vld [vmem:[%s1759_s3 + $0x8] sm:$0xff]  ;;  %v236_v1 = vld [vmem:[%s1759_s3] sm:$0xff]  ;;  %vm252_vm0 = vcmask 64512   ;;  %v1636_v3 = vmov 0.0   ;;  %v239_v5 = vld [vmem:[%s1759_s3 + $0x18] sm:$0xff]  ;;  %vm879_vm1 = vcmask 7168  }
  0x35   : > { %v234_v2 = vld [vmem:[%s1972_s1] sm:$0xff]  ;;  %289 = vmatprep.subr.mxu0 %v237_v0  ;;  %323 = vmatprep.mubr.f32.mxu0 %v1636_v3  ;;  %v241_v4 = vld [vmem:[%s1759_s3 + $0x28] sm:$0xff]  ;;  %v238_v7 = vld [vmem:[%s1759_s3 + $0x10] sm:$0xff]  ;;  %880 = vst.msk [vmem:[#allocation2] sm:$0xff] %vm879_vm1, %v1636_v3 }
  0x36   : > { %v240_v6 = vld [vmem:[%s1759_s3 + $0x20] sm:$0xff]  ;;  %290 = vmatpush1.msra.mxu0 %v236_v1  ;;  %366 = vmatprep.subr.mxu1 %v239_v5  ;;  %v243_v8 = vld [vmem:[%s1759_s3 + $0x38] sm:$0xff]  ;;  %v235_v9 = vld [vmem:[%s1972_s1 + $0x8] sm:$0xff]  ;;  %881 = vst.msk [vmem:[#allocation2 + $0x8] sm:$0xff] %vm879_vm1, %v1636_v3 }
  0x37   : > { %1397 = vmatmul.mubr.msk.f32.vlgmr.msra.gmra.mxu0 %vm252_vm0, %v234_v2  ;;  %443 = vmatprep.subr.mxu0 %v241_v4  ;;  %v242_v10 = vld [vmem:[%s1759_s3 + $0x30] sm:$0xff]  ;;  %v245_v11 = vld [vmem:[%s1759_s3 + $0x48] sm:$0xff]  ;;  %v247_v12 = vld [vmem:[%s1759_s3 + $0x58] sm:$0xff]  ;;  %882 = vst.msk [vmem:[#allocation3] sm:$0xff] %vm879_vm1, %v1636_v3 }
  0x38   : > { %444 = vmatpush1.msra.mxu0 %v240_v6  ;;  %367 = vmatpush1.msra.mxu1 %v238_v7  ;;  %v244_v13 = vld [vmem:[%s1759_s3 + $0x40] sm:$0xff]  ;;  %v249_v14 = vld [vmem:[%s1759_s3 + $0x68] sm:$0xff]  ;;  %v246_v15 = vld [vmem:[%s1759_s3 + $0x50] sm:$0xff]  ;;  %883 = vst.msk [vmem:[#allocation3 + $0x8] sm:$0xff] %vm879_vm1, %v1636_v3 }
  0x39   : > { %400 = vmatprep.mubr.f32.mxu1 %v1636_v3  ;;  %329 = vmatprep.mubr.f32.mxu0 %v1636_v3  ;;  %v251_v16 = vld [vmem:[%s1759_s3 + $0x78] sm:$0xff]  ;;  %v248_v17 = vld [vmem:[%s1759_s3 + $0x60] sm:$0xff]  ;;  %v250_v18 = vld [vmem:[%s1759_s3 + $0x70] sm:$0xff] }
  0x3a   : > { %1399 = vmatmul.mubr.msk.f32.vlgmr.msra.gmra.mxu1 %vm252_vm0, %v234_v2  ;;  %520 = vmatprep.subr.mxu1 %v243_v8 }
  0x3b   : > { %1398 = vmatmul.mubr.msk.f32.gmra.mxu0 %vm252_vm0, %v235_v9  ;;  %521 = vmatpush1.msra.mxu1 %v242_v10 }
  0x3c   : > { %406 = vmatprep.mubr.f32.mxu1 %v1636_v3  ;;  %477 = vmatprep.mubr.f32.mxu0 %v1636_v3 }
  0x3d   : > { %597 = vmatprep.subr.mxu0 %v245_v11  ;;  %674 = vmatprep.subr.mxu1 %v247_v12 }
  0x3e   : > { %1400 = vmatmul.mubr.msk.f32.gmra.mxu1 %vm252_vm0, %v235_v9 }
  0x3f   : > { %1401 = vmatmul.mubr.msk.f32.vlgmr.msra.gmra.mxu0 %vm252_vm0, %v234_v2  ;;  %554 = vmatprep.mubr.f32.mxu1 %v1636_v3 }
  0x40   : > { %598 = vmatpush1.msra.mxu0 %v244_v13  ;;  %483 = vmatprep.mubr.f32.mxu0 %v1636_v3 }
  0x41   : > { %751 = vmatprep.subr.mxu0 %v249_v14 }
  0x42   : > { %1403 = vmatmul.mubr.msk.f32.vlgmr.msra.gmra.mxu1 %vm252_vm0, %v234_v2 }
  0x43   : > { %1402 = vmatmul.mubr.msk.f32.gmra.mxu0 %vm252_vm0, %v235_v9  ;;  %675 = vmatpush1.msra.mxu1 %v246_v15 }
  0x44   : > { %560 = vmatprep.mubr.f32.mxu1 %v1636_v3  ;;  %631 = vmatprep.mubr.f32.mxu0 %v1636_v3 }
  0x45   : > { %828 = vmatprep.subr.mxu1 %v251_v16 }
  0x46   : > { %1404 = vmatmul.mubr.msk.f32.gmra.mxu1 %vm252_vm0, %v235_v9 }
  0x47   : > { %1405 = vmatmul.mubr.msk.f32.vlgmr.msra.gmra.mxu0 %vm252_vm0, %v234_v2  ;;  %708 = vmatprep.mubr.f32.mxu1 %v1636_v3 }
  0x48   : > { %752 = vmatpush1.msra.mxu0 %v248_v17  ;;  %637 = vmatprep.mubr.f32.mxu0 %v1636_v3 }
  0x4a   : > { %1407 = vmatmul.mubr.msk.f32.vlgmr.msra.gmra.mxu1 %vm252_vm0, %v234_v2 }
  0x4b   : > { %1406 = vmatmul.mubr.msk.f32.gmra.mxu0 %vm252_vm0, %v235_v9  ;;  %829 = vmatpush1.msra.mxu1 %v250_v18 }
  0x4c   : > { %714 = vmatprep.mubr.f32.mxu1 %v1636_v3  ;;  %785 = vmatprep.mubr.f32.mxu0 %v1636_v3 }
  0x4e   : > { %1408 = vmatmul.mubr.msk.f32.gmra.mxu1 %vm252_vm0, %v235_v9 }
  0x4f   : > { %1409 = vmatmul.mubr.msk.f32.vlgmr.msra.gmra.mxu0 %vm252_vm0, %v234_v2  ;;  %862 = vmatprep.mubr.f32.mxu1 %v1636_v3 }
  0x50   : > { %791 = vmatprep.mubr.f32.mxu0 %v1636_v3 }
  0x52   : > { %1411 = vmatmul.mubr.msk.f32.vlgmr.msra.gmra.mxu1 %vm252_vm0, %v234_v2 }
  0x53   : > { %1410 = vmatmul.mubr.msk.f32.gmra.mxu0 %vm252_vm0, %v235_v9  ;;  %868 = vmatprep.mubr.f32.mxu1 %v1636_v3 }
  0x56   : > { %1412 = vmatmul.mubr.msk.f32.gmra.mxu1 %vm252_vm0, %v235_v9 }
  0xf7   : > { %v325_v19 = vpop.f32.mrf.mxu0 }
  0xf8   : > { %1000 = vst [vmem:[#allocation4 + $0xb0] sm:$0xff] %v325_v19  ;;  %v927_v21 = vmul.f32 %v325_v19, %v325_v19 }
  0xf9   : > { %v327_v20 = vpop.f32.mrf.mxu0 }
  0xfa   : > { %v886_v22 = vadd.f32 %v327_v20, %v325_v19  ;;  %v928_v23 = vmul.f32 %v327_v20, %v327_v20  ;;  %1001 = vst [vmem:[#allocation4] sm:$0xff] %v327_v20  ;;  %v402_v24 = vpop.f32.mrf.mxu1 }
  0xfb   : > { %v929_v25 = vmul.f32 %v402_v24, %v402_v24  ;;  %1002 = vst [vmem:[#allocation4 + $0xd8] sm:$0xff] %v402_v24  ;;  %v331_v26 = vpop.f32.mrf.mxu0 }
  0xfc   : > { %v959_v27 = vadd.f32 %v928_v23, %v927_v21  ;;  %v887_v28 = vadd.f32 %v886_v22, %v402_v24  ;;  %1016 = vst [vmem:[#allocation4 + $0x38] sm:$0xff] %v331_v26  ;;  %v404_v29 = vpop.f32.mrf.mxu1  ;;  %v943_v30 = vmul.f32 %v331_v26, %v331_v26 }
  0xfd   : > { %v930_v31 = vmul.f32 %v404_v29, %v404_v29  ;;  %1003 = vst [vmem:[#allocation4 + $0x18] sm:$0xff] %v404_v29  ;;  %v333_v32 = vpop.f32.mrf.mxu0 }
  0xfe   : > { %v960_v33 = vadd.f32 %v959_v27, %v929_v25  ;;  %v888_v34 = vadd.f32 %v887_v28, %v404_v29  ;;  %v903_v35 = vadd.f32 %v333_v32, %v331_v26  ;;  %v944_v36 = vmul.f32 %v333_v32, %v333_v32  ;;  %1017 = vst [vmem:[#allocation4 + $0x58] sm:$0xff] %v333_v32  ;;  %v408_v37 = vpop.f32.mrf.mxu1 }
  0xff   : > { %v945_v38 = vmul.f32 %v408_v37, %v408_v37  ;;  %1018 = vst [vmem:[#allocation4 + $0x40] sm:$0xff] %v408_v37  ;;  %v479_v39 = vpop.f32.mrf.mxu0 }
 0x100   : > { %v961_v40 = vadd.f32 %v960_v33, %v930_v31  ;;  %v976_v41 = vadd.f32 %v944_v36, %v943_v30  ;;  %v904_v42 = vadd.f32 %v903_v35, %v408_v37  ;;  %v889_v43 = vadd.f32 %v888_v34, %v479_v39  ;;  %1004 = vst [vmem:[#allocation4 + $0x50] sm:$0xff] %v479_v39  ;;  %v410_v44 = vpop.f32.mrf.mxu1 }
 0x101   : > { %v931_v45 = vmul.f32 %v479_v39, %v479_v39  ;;  %v946_v46 = vmul.f32 %v410_v44, %v410_v44  ;;  %1019 = vst [vmem:[#allocation4 + $0xc8] sm:$0xff] %v410_v44  ;;  %v481_v47 = vpop.f32.mrf.mxu0 }
 0x102   : > { %v977_v48 = vadd.f32 %v976_v41, %v945_v38  ;;  %v905_v49 = vadd.f32 %v904_v42, %v410_v44  ;;  %v890_v50 = vadd.f32 %v889_v43, %v481_v47  ;;  %v932_v51 = vmul.f32 %v481_v47, %v481_v47  ;;  %1005 = vst [vmem:[#allocation4 + $0x68] sm:$0xff] %v481_v47  ;;  %v556_v52 = vpop.f32.mrf.mxu1 }
 0x103   : > { %v962_v53 = vadd.f32 %v961_v40, %v931_v45  ;;  %v933_v54 = vmul.f32 %v556_v52, %v556_v52  ;;  %1006 = vst [vmem:[#allocation4 + $0x30] sm:$0xff] %v556_v52  ;;  %v485_v55 = vpop.f32.mrf.mxu0 }
 0x104   : > { %v978_v56 = vadd.f32 %v977_v48, %v946_v46  ;;  %v891_v57 = vadd.f32 %v890_v50, %v556_v52  ;;  %v906_v58 = vadd.f32 %v905_v49, %v485_v55  ;;  %v947_v59 = vmul.f32 %v485_v55, %v485_v55  ;;  %1020 = vst [vmem:[#allocation4 + $0xe0] sm:$0xff] %v485_v55  ;;  %v558_v60 = vpop.f32.mrf.mxu1 }
 0x105   : > { %v963_v61 = vadd.f32 %v962_v53, %v932_v51  ;;  %1007 = vst [vmem:[#allocation4 + $0x48] sm:$0xff] %v558_v60  ;;  %v487_v62 = vpop.f32.mrf.mxu0  ;;  %v934_v5 = vmul.f32 %v558_v60, %v558_v60 }
 0x106   : > { %v979_v63 = vadd.f32 %v978_v56, %v947_v59  ;;  %v892_v0 = vadd.f32 %v891_v57, %v558_v60  ;;  %v907_v1 = vadd.f32 %v906_v58, %v487_v62  ;;  %v948_v2 = vmul.f32 %v487_v62, %v487_v62  ;;  %1021 = vst [vmem:[#allocation4 + $0x90] sm:$0xff] %v487_v62  ;;  %v562_v3 = vpop.f32.mrf.mxu1 }
 0x107   : > { %v964_v4 = vadd.f32 %v963_v61, %v933_v54  ;;  %v949_v6 = vmul.f32 %v562_v3, %v562_v3  ;;  %1022 = vst [vmem:[#allocation4 + $0x70] sm:$0xff] %v562_v3  ;;  %v633_v7 = vpop.f32.mrf.mxu0 }
 0x108   : > { %v980_v8 = vadd.f32 %v979_v63, %v948_v2  ;;  %v908_v9 = vadd.f32 %v907_v1, %v562_v3  ;;  %v893_v10 = vadd.f32 %v892_v0, %v633_v7  ;;  %v935_v11 = vmul.f32 %v633_v7, %v633_v7  ;;  %1008 = vst [vmem:[#allocation4 + $0x80] sm:$0xff] %v633_v7  ;;  %v564_v12 = vpop.f32.mrf.mxu1 }
 0x109   : > { %v965_v13 = vadd.f32 %v964_v4, %v934_v5  ;;  %v950_v14 = vmul.f32 %v564_v12, %v564_v12  ;;  %1023 = vst [vmem:[#allocation4 + $0xc0] sm:$0xff] %v564_v12  ;;  %v635_v15 = vpop.f32.mrf.mxu0 }
 0x10a   : > { %v981_v16 = vadd.f32 %v980_v8, %v949_v6  ;;  %v909_v17 = vadd.f32 %v908_v9, %v564_v12  ;;  %v894_v18 = vadd.f32 %v893_v10, %v635_v15  ;;  %v936_v19 = vmul.f32 %v635_v15, %v635_v15  ;;  %1009 = vst [vmem:[#allocation4 + $0x88] sm:$0xff] %v635_v15  ;;  %v710_v20 = vpop.f32.mrf.mxu1  ;;  %v884_v15 = vld [vmem:[#allocation2] sm:$0xff] }
 0x10b   : > { %v966_v21 = vadd.f32 %v965_v13, %v935_v11  ;;  %v937_v22 = vmul.f32 %v710_v20, %v710_v20  ;;  %1010 = vst [vmem:[#allocation4 + $0xe8] sm:$0xff] %v710_v20  ;;  %v639_v23 = vpop.f32.mrf.mxu0 }
 0x10c   : > { %v982_v24 = vadd.f32 %v981_v16, %v950_v14  ;;  %v895_v25 = vadd.f32 %v894_v18, %v710_v20  ;;  %v910_v26 = vadd.f32 %v909_v17, %v639_v23  ;;  %v951_v27 = vmul.f32 %v639_v23, %v639_v23  ;;  %1024 = vst [vmem:[#allocation4 + $0xa8] sm:$0xff] %v639_v23  ;;  %v712_v28 = vpop.f32.mrf.mxu1  ;;  %v925_v18 = vld [vmem:[#allocation3] sm:$0xff] }
 0x10d   : > { %v967_v29 = vadd.f32 %v966_v21, %v936_v19  ;;  %1011 = vst [vmem:[#allocation4 + $0xb8] sm:$0xff] %v712_v28  ;;  %v641_v30 = vpop.f32.mrf.mxu0  ;;  %v938_v37 = vmul.f32 %v712_v28, %v712_v28  ;;  %v885_v19 = vld [vmem:[#allocation2 + $0x8] sm:$0xff] }
 0x10e   : > { %v983_v31 = vadd.f32 %v982_v24, %v951_v27  ;;  %v896_v32 = vadd.f32 %v895_v25, %v712_v28  ;;  %v911_v33 = vadd.f32 %v910_v26, %v641_v30  ;;  %v952_v34 = vmul.f32 %v641_v30, %v641_v30  ;;  %1025 = vst [vmem:[#allocation4 + $0xd0] sm:$0xff] %v641_v30  ;;  %v716_v35 = vpop.f32.mrf.mxu1  ;;  %v926_v24 = vld [vmem:[#allocation3 + $0x8] sm:$0xff] }
 0x10f   : > { %v968_v36 = vadd.f32 %v967_v29, %v937_v22  ;;  %v953_v38 = vmul.f32 %v716_v35, %v716_v35  ;;  %1026 = vst [vmem:[#allocation4 + $0x10] sm:$0xff] %v716_v35  ;;  %v787_v39 = vpop.f32.mrf.mxu0 }
 0x110   : > { %v984_v40 = vadd.f32 %v983_v31, %v952_v34  ;;  %v912_v41 = vadd.f32 %v911_v33, %v716_v35  ;;  %v897_v42 = vadd.f32 %v896_v32, %v787_v39  ;;  %v939_v43 = vmul.f32 %v787_v39, %v787_v39  ;;  %1012 = vst [vmem:[#allocation4 + $0x60] sm:$0xff] %v787_v39  ;;  %v718_v44 = vpop.f32.mrf.mxu1 }
 0x111   : > { %v969_v45 = vadd.f32 %v968_v36, %v938_v37  ;;  %v954_v46 = vmul.f32 %v718_v44, %v718_v44  ;;  %1027 = vst [vmem:[#allocation4 + $0x28] sm:$0xff] %v718_v44  ;;  %v789_v47 = vpop.f32.mrf.mxu0 }
 0x112   : > { %v985_v48 = vadd.f32 %v984_v40, %v953_v38  ;;  %v913_v49 = vadd.f32 %v912_v41, %v718_v44  ;;  %v898_v50 = vadd.f32 %v897_v42, %v789_v47  ;;  %v940_v51 = vmul.f32 %v789_v47, %v789_v47  ;;  %1013 = vst [vmem:[#allocation4 + $0xf0] sm:$0xff] %v789_v47  ;;  %v864_v52 = vpop.f32.mrf.mxu1 }
 0x113   : > { %v970_v53 = vadd.f32 %v969_v45, %v939_v43  ;;  %v941_v54 = vmul.f32 %v864_v52, %v864_v52  ;;  %1014 = vst [vmem:[#allocation4 + $0x8] sm:$0xff] %v864_v52  ;;  %v793_v55 = vpop.f32.mrf.mxu0 }
 0x114   : > { %v986_v56 = vadd.f32 %v985_v48, %v954_v46  ;;  %v914_v57 = vadd.f32 %v913_v49, %v793_v55  ;;  %v955_v58 = vmul.f32 %v793_v55, %v793_v55  ;;  %1028 = vst [vmem:[#allocation4 + $0xa0] sm:$0xff] %v793_v55  ;;  %v866_v59 = vpop.f32.mrf.mxu1  ;;  %v899_v60 = vadd.f32 %v898_v50, %v864_v52 }
 0x115   : > { %1015 = vst [vmem:[#allocation4 + $0x78] sm:$0xff] %v866_v59  ;;  %v795_v61 = vpop.f32.mrf.mxu0  ;;  %v971_v62 = vadd.f32 %v970_v53, %v940_v51  ;;  %v942_v5 = vmul.f32 %v866_v59, %v866_v59 }
 0x116   : > { %v987_v63 = vadd.f32 %v986_v56, %v955_v58  ;;  %v915_v0 = vadd.f32 %v914_v57, %v795_v61  ;;  %v956_v1 = vmul.f32 %v795_v61, %v795_v61  ;;  %1029 = vst [vmem:[#allocation4 + $0xf8] sm:$0xff] %v795_v61  ;;  %v870_v2 = vpop.f32.mrf.mxu1  ;;  %v900_v3 = vadd.f32 %v899_v60, %v866_v59 }
 0x117   : > { %v957_v4 = vmul.f32 %v870_v2, %v870_v2  ;;  %1030 = vst [vmem:[#allocation4 + $0x20] sm:$0xff] %v870_v2  ;;  %v972_v6 = vadd.f32 %v971_v62, %v941_v54 }
 0x118   : > { %v988_v7 = vadd.f32 %v987_v63, %v956_v1  ;;  %v872_v8 = vpop.f32.mrf.mxu1  ;;  %901 = vadd.xlane.f32.xlu0 %v900_v3  ;;  %v916_v9 = vadd.f32 %v915_v0, %v870_v2 }
 0x119   : > { %1031 = vst [vmem:[#allocation4 + $0x98] sm:$0xff] %v872_v8  ;;  %v973_v10 = vadd.f32 %v972_v6, %v942_v5  ;;  %v958_v11 = vmul.f32 %v872_v8, %v872_v8 }
 0x11a   : > { %v917_v12 = vadd.f32 %v916_v9, %v872_v8  ;;  %v989_v13 = vadd.f32 %v988_v7, %v957_v4 }
 0x11b   : > { %974 = vadd.xlane.f32.xlu1 %v973_v10 }
 0x11c   : > { %918 = vadd.xlane.f32.xlu0 %v917_v12  ;;  %v990_v14 = vadd.f32 %v989_v13, %v958_v11 }
 0x11f   : > { %991 = vadd.xlane.f32.xlu1 %v990_v14 }
 0x1a1   : > { %v902_v16 = vpop.xlane.xlu0 %901 }
 0x1a2   : > { %v920_v17 = vadd.f32 %v902_v16, %v884_v15 }
 0x1a4   : > { %923 = vst.msk [vmem:[#allocation2] sm:$0xff] %vm879_vm1, %v920_v17  ;;  %v975_v20 = vpop.xlane.xlu1 %974 }
 0x1a5   : > { %v993_v21 = vadd.f32 %v975_v20, %v925_v18  ;;  %v919_v22 = vpop.xlane.xlu0 %918 }
 0x1a6   : > { %v921_v23 = vadd.f32 %v919_v22, %v885_v19 }
 0x1a7   : > { %995 = vst.msk [vmem:[#allocation3] sm:$0xff] %vm879_vm1, %v993_v21 }
 0x1a8   : > { %924 = vst.msk [vmem:[#allocation2 + $0x8] sm:$0xff] %vm879_vm1, %v921_v23  ;;  %v992_v25 = vpop.xlane.xlu1 %991 }
 0x1a9   : > { %v994_v26 = vadd.f32 %v992_v25, %v926_v24 }
 0x1ab   : > { %v1035_v27 = vld [vmem:[#allocation2] sm:$0xff]  ;;  %996 = vst.msk [vmem:[#allocation3 + $0x8] sm:$0xff] %vm879_vm1, %v994_v26 }
 0x1ac   : > { %v1037_v28 = vmul.f32 0.00048828125, %v1035_v27 }
 0x1ae   : > { %v1043_v29 = vmul.f32 %v1037_v28, %v1037_v28  ;;  %1047 = vst.msk [vmem:[#allocation2] sm:$0xff] %vm879_vm1, %v1037_v28  ;;  %v1039_v30 = vld [vmem:[#allocation3] sm:$0xff] }
 0x1af   : > { %v1041_v31 = vmul.f32 0.00048828125, %v1039_v30  ;;  %v1036_v32 = vld [vmem:[#allocation2 + $0x8] sm:$0xff] }
 0x1b0   : > { %v1038_v33 = vmul.f32 0.00048828125, %v1036_v32 }
 0x1b1   : > { %v1045_v34 = vsub.f32 %v1041_v31, %v1043_v29 }
 0x1b2   : > { %v1044_v35 = vmul.f32 %v1038_v33, %v1038_v33  ;;  %1048 = vst.msk [vmem:[#allocation2 + $0x8] sm:$0xff] %vm879_vm1, %v1038_v33  ;;  %v1040_v36 = vld [vmem:[#allocation3 + $0x8] sm:$0xff] }
 0x1b3   : > { %v1049_v37 = vmax.f32 %v1045_v34, 0.0  ;;  %v1042_v38 = vmul.f32 0.00048828125, %v1040_v36 }
 0x1b5   : > { %v1051_v39 = vadd.f32 1e-05, %v1049_v37  ;;  %v1046_v40 = vsub.f32 %v1042_v38, %v1044_v35 }
 0x1b7   : > { %1503 = vrsqrt.f32 %v1051_v39  ;;  %v1050_v41 = vmax.f32 %v1046_v40, 0.0 }
 0x1b9   : > { %v1052_v42 = vadd.f32 1e-05, %v1050_v41 }
 0x1bb   : > { %1505 = vrsqrt.f32 %v1052_v42 }
 0x1c4   : > { %v1504_v43 = vpop.eup %1503 }
 0x1c5   : > { %1055 = vst.msk [vmem:[#allocation3] sm:$0xff] %vm879_vm1, %v1504_v43 }
 0x1c8   : > { %v1506_v44 = vpop.eup %1505 }
 0x1c9   : > { %1056 = vst.msk [vmem:[#allocation3 + $0x8] sm:$0xff] %vm879_vm1, %v1506_v44 }
 0x1ca PF: > { %p1413_p9 = scmp.ne.s32.totalorder %s1617_s12, 1 }
 0x1cc   : > { %1060 = sbr.rel (%p1413_p9) target bundleno = 622 (0x26e), region = 48 }
 0x1d1   : > { %v1140_v45 = vld [vmem:[#allocation3] sm:$0xff]  ;;  %v1096_v46 = vld [vmem:[#allocation2] sm:$0xff]  ;;  %v1637_v47 = vmov 0   ;;  %v1141_v48 = vld [vmem:[#allocation3 + $0x8] sm:$0xff] }
 0x1d2   : > { %1508 = vset.pattern.permute.xlu1 %v1637_v47  ;;  %1507 = vset.pattern.permute.xlu0 %v1637_v47  ;;  %v1097_v49 = vld [vmem:[#allocation2 + $0x8] sm:$0xff]  ;;  %v1064_v50 = vld [vmem:[#allocation4 + $0xb0] sm:$0xff]  ;;  %v1065_v51 = vld [vmem:[#allocation4] sm:$0xff] }
 0x1d3   : > { %1144 = vperm.xlu1 %1508, %v1140_v45   ;;  %1100 = vperm.xlu0 %1507, %v1096_v46   ;;  %v1066_v52 = vld [vmem:[#allocation4 + $0xd8] sm:$0xff]  ;;  %v1068_v54 = vld [vmem:[#allocation4 + $0x50] sm:$0xff]  ;;  %v1069_v55 = vld [vmem:[#allocation4 + $0x68] sm:$0xff] }
 0x1d4   : > { %v1067_v53 = vld [vmem:[#allocation4 + $0x18] sm:$0xff]  ;;  %v1070_v56 = vld [vmem:[#allocation4 + $0x30] sm:$0xff]  ;;  %v1071_v57 = vld [vmem:[#allocation4 + $0x48] sm:$0xff] }
 0x1d5   : > { %v1072_v58 = vld [vmem:[#allocation4 + $0x80] sm:$0xff]  ;;  %v1073_v59 = vld [vmem:[#allocation4 + $0x88] sm:$0xff]  ;;  %v1075_v62 = vld [vmem:[#allocation4 + $0xb8] sm:$0xff] }
 0x1d6   : > { %v1074_v61 = vld [vmem:[#allocation4 + $0xe8] sm:$0xff]  ;;  %v1076_v63 = vld [vmem:[#allocation4 + $0x60] sm:$0xff]  ;;  %v1077_v0 = vld [vmem:[#allocation4 + $0xf0] sm:$0xff] }
 0x1d7   : > { %1149 = vperm.xlu1 %1508, %v1141_v48   ;;  %1105 = vperm.xlu0 %1507, %v1097_v49   ;;  %v1078_v1 = vld [vmem:[#allocation4 + $0x8] sm:$0xff]  ;;  %v1079_v2 = vld [vmem:[#allocation4 + $0x78] sm:$0xff]  ;;  %v1844_v38 = vld [vmem:[#allocation4 + $0x40] sm:$0xff] }
 0x1d8   : > { %v1840_v36 = vld [vmem:[#allocation4 + $0x38] sm:$0xff]  ;;  %v1846_v39 = vld [vmem:[#allocation4 + $0xc8] sm:$0xff]  ;;  %v1848_v44 = vld [vmem:[#allocation4 + $0xe0] sm:$0xff] }
 0x1d9   : > { %v1842_v37 = vld [vmem:[#allocation4 + $0x58] sm:$0xff]  ;;  %v1850_v45 = vld [vmem:[#allocation4 + $0x90] sm:$0xff] }
 0x1da   : > { %v1852_v46 = vld [vmem:[#allocation4 + $0x70] sm:$0xff] }
 0x24e   : > { %v1101_v60 = vpop.permute.xlu0 %1100  ;;  %v1145_v15 = vpop.permute.xlu1 %1144 }
 0x24f   : > { %v1108_v3 = vsub.f32 %v1064_v50, %v1101_v60  ;;  %v1109_v4 = vsub.f32 %v1065_v51, %v1101_v60  ;;  %v1110_v5 = vsub.f32 %v1066_v52, %v1101_v60  ;;  %v1111_v6 = vsub.f32 %v1067_v53, %v1101_v60  ;;  %v1087_v52 = vld [vmem:[#allocation4 + $0xc0] sm:$0xff]  ;;  %v1088_v53 = vld [vmem:[#allocation4 + $0xa8] sm:$0xff] }
 0x250   : > { %v1112_v7 = vsub.f32 %v1068_v54, %v1101_v60  ;;  %v1113_v8 = vsub.f32 %v1069_v55, %v1101_v60  ;;  %v1114_v9 = vsub.f32 %v1070_v56, %v1101_v60  ;;  %v1115_v10 = vsub.f32 %v1071_v57, %v1101_v60 }
 0x251   : > { %v1116_v11 = vsub.f32 %v1072_v58, %v1101_v60  ;;  %v1117_v12 = vsub.f32 %v1073_v59, %v1101_v60  ;;  %v1118_v13 = vsub.f32 %v1074_v61, %v1101_v60  ;;  %v1119_v14 = vsub.f32 %v1075_v62, %v1101_v60  ;;  %v1089_v58 = vld [vmem:[#allocation4 + $0xd0] sm:$0xff] }
 0x252   : > { %v1120_v16 = vsub.f32 %v1076_v63, %v1101_v60  ;;  %v1121_v17 = vsub.f32 %v1077_v0, %v1101_v60  ;;  %v1122_v18 = vsub.f32 %v1078_v1, %v1101_v60  ;;  %v1123_v19 = vsub.f32 %v1079_v2, %v1101_v60  ;;  %v1854_v51 = vpop.permute.xlu0 %1105  ;;  %v1090_v59 = vld [vmem:[#allocation4 + $0x10] sm:$0xff]  ;;  %v1091_v0 = vld [vmem:[#allocation4 + $0x28] sm:$0xff]  ;;  %v1092_v1 = vld [vmem:[#allocation4 + $0xa0] sm:$0xff] }
 0x253   : > { %v1152_v20 = vmul.f32 %v1145_v15, %v1108_v3  ;;  %v1153_v21 = vmul.f32 %v1145_v15, %v1109_v4  ;;  %v1154_v22 = vmul.f32 %v1145_v15, %v1110_v5  ;;  %v1155_v23 = vmul.f32 %v1145_v15, %v1111_v6  ;;  %v1093_v2 = vld [vmem:[#allocation4 + $0xf8] sm:$0xff]  ;;  %v1094_v3 = vld [vmem:[#allocation4 + $0x20] sm:$0xff] }
 0x254   : > { %v1156_v24 = vmul.f32 %v1145_v15, %v1112_v7  ;;  %v1157_v25 = vmul.f32 %v1145_v15, %v1113_v8  ;;  %v1158_v26 = vmul.f32 %v1145_v15, %v1114_v9  ;;  %v1159_v27 = vmul.f32 %v1145_v15, %v1115_v10  ;;  %v1095_v4 = vld [vmem:[#allocation4 + $0x98] sm:$0xff] }
 0x255   : > { %v1160_v28 = vmul.f32 %v1145_v15, %v1116_v11  ;;  %v1161_v29 = vmul.f32 %v1145_v15, %v1117_v12  ;;  %v1162_v30 = vmul.f32 %v1145_v15, %v1118_v13  ;;  %v1163_v31 = vmul.f32 %v1145_v15, %v1119_v14 }
 0x256   : > { %v1164_v32 = vmul.f32 %v1145_v15, %v1120_v16  ;;  %v1165_v33 = vmul.f32 %v1145_v15, %v1121_v17  ;;  %v1166_v34 = vmul.f32 %v1145_v15, %v1122_v18  ;;  %v1167_v35 = vmul.f32 %v1145_v15, %v1123_v19  ;;  %v1150_v17 = vpop.permute.xlu1 %1149 }
 0x257   : > { %v1184_v40 = vmax.f32 %v1152_v20, 0.0  ;;  %v1185_v41 = vmax.f32 %v1153_v21, 0.0  ;;  %v1186_v42 = vmax.f32 %v1154_v22, 0.0  ;;  %v1187_v43 = vmax.f32 %v1155_v23, 0.0 }
 0x258   : > { %v1188_v47 = vmax.f32 %v1156_v24, 0.0  ;;  %v1189_v48 = vmax.f32 %v1157_v25, 0.0  ;;  %v1190_v49 = vmax.f32 %v1158_v26, 0.0  ;;  %v1191_v50 = vmax.f32 %v1159_v27, 0.0 }
 0x259   : > { %v1192_v54 = vmax.f32 %v1160_v28, 0.0  ;;  %v1193_v55 = vmax.f32 %v1161_v29, 0.0  ;;  %v1194_v56 = vmax.f32 %v1162_v30, 0.0  ;;  %v1195_v57 = vmax.f32 %v1163_v31, 0.0  ;;  %1216 = vst [vmem:[%s1766_s5] sm:$0xff] %v1184_v40  ;;  %1217 = vst [vmem:[%s1766_s5 + $0x8] sm:$0xff] %v1185_v41 }
 0x25a   : > { %1218 = vst [vmem:[%s1766_s5 + $0x10] sm:$0xff] %v1186_v42  ;;  %1219 = vst [vmem:[%s1766_s5 + $0x18] sm:$0xff] %v1187_v43  ;;  %v1196_v60 = vmax.f32 %v1164_v32, 0.0  ;;  %v1197_v61 = vmax.f32 %v1165_v33, 0.0  ;;  %v1198_v62 = vmax.f32 %v1166_v34, 0.0  ;;  %v1199_v63 = vmax.f32 %v1167_v35, 0.0 }
 0x25b   : > { %1220 = vst [vmem:[%s1766_s5 + $0x20] sm:$0xff] %v1188_v47  ;;  %1221 = vst [vmem:[%s1766_s5 + $0x28] sm:$0xff] %v1189_v48  ;;  %v1124_v5 = vsub.f32 %v1840_v36, %v1854_v51  ;;  %v1125_v6 = vsub.f32 %v1842_v37, %v1854_v51  ;;  %v1126_v7 = vsub.f32 %v1844_v38, %v1854_v51 }
 0x25c   : > { %1222 = vst [vmem:[%s1766_s5 + $0x30] sm:$0xff] %v1190_v49  ;;  %1223 = vst [vmem:[%s1766_s5 + $0x38] sm:$0xff] %v1191_v50  ;;  %v1127_v8 = vsub.f32 %v1846_v39, %v1854_v51  ;;  %v1128_v9 = vsub.f32 %v1848_v44, %v1854_v51  ;;  %v1129_v10 = vsub.f32 %v1850_v45, %v1854_v51 }
 0x25d   : > { %1224 = vst [vmem:[%s1766_s5 + $0x40] sm:$0xff] %v1192_v54  ;;  %1225 = vst [vmem:[%s1766_s5 + $0x48] sm:$0xff] %v1193_v55  ;;  %v1130_v11 = vsub.f32 %v1852_v46, %v1854_v51  ;;  %v1131_v12 = vsub.f32 %v1087_v52, %v1854_v51  ;;  %v1132_v13 = vsub.f32 %v1088_v53, %v1854_v51 }
 0x25e   : > { %1226 = vst [vmem:[%s1766_s5 + $0x50] sm:$0xff] %v1194_v56  ;;  %1227 = vst [vmem:[%s1766_s5 + $0x58] sm:$0xff] %v1195_v57  ;;  %v1133_v14 = vsub.f32 %v1089_v58, %v1854_v51  ;;  %v1134_v15 = vsub.f32 %v1090_v59, %v1854_v51  ;;  %v1135_v16 = vsub.f32 %v1091_v0, %v1854_v51 }
 0x25f   : > { %1228 = vst [vmem:[%s1766_s5 + $0x60] sm:$0xff] %v1196_v60  ;;  %1229 = vst [vmem:[%s1766_s5 + $0x68] sm:$0xff] %v1197_v61  ;;  %v1136_v18 = vsub.f32 %v1092_v1, %v1854_v51  ;;  %v1137_v19 = vsub.f32 %v1093_v2, %v1854_v51  ;;  %v1138_v20 = vsub.f32 %v1094_v3, %v1854_v51 }
 0x260   : > { %1230 = vst [vmem:[%s1766_s5 + $0x70] sm:$0xff] %v1198_v62  ;;  %1231 = vst [vmem:[%s1766_s5 + $0x78] sm:$0xff] %v1199_v63  ;;  %v1139_v21 = vsub.f32 %v1095_v4, %v1854_v51  ;;  %v1168_v22 = vmul.f32 %v1150_v17, %v1124_v5  ;;  %v1169_v23 = vmul.f32 %v1150_v17, %v1125_v6 }
 0x261   : > { %v1170_v24 = vmul.f32 %v1150_v17, %v1126_v7  ;;  %v1171_v25 = vmul.f32 %v1150_v17, %v1127_v8  ;;  %v1172_v26 = vmul.f32 %v1150_v17, %v1128_v9  ;;  %v1173_v27 = vmul.f32 %v1150_v17, %v1129_v10 }
 0x262   : > { %v1174_v28 = vmul.f32 %v1150_v17, %v1130_v11  ;;  %v1175_v29 = vmul.f32 %v1150_v17, %v1131_v12  ;;  %v1176_v30 = vmul.f32 %v1150_v17, %v1132_v13  ;;  %v1177_v31 = vmul.f32 %v1150_v17, %v1133_v14 }
 0x263   : > { %v1178_v32 = vmul.f32 %v1150_v17, %v1134_v15  ;;  %v1179_v33 = vmul.f32 %v1150_v17, %v1135_v16  ;;  %v1180_v34 = vmul.f32 %v1150_v17, %v1136_v18  ;;  %v1181_v35 = vmul.f32 %v1150_v17, %v1137_v19 }
 0x264   : > { %v1182_v36 = vmul.f32 %v1150_v17, %v1138_v20  ;;  %v1183_v37 = vmul.f32 %v1150_v17, %v1139_v21  ;;  %v1200_v38 = vmax.f32 %v1168_v22, 0.0  ;;  %v1201_v39 = vmax.f32 %v1169_v23, 0.0 }
 0x265   : > { %v1202_v40 = vmax.f32 %v1170_v24, 0.0  ;;  %v1203_v41 = vmax.f32 %v1171_v25, 0.0  ;;  %v1204_v42 = vmax.f32 %v1172_v26, 0.0  ;;  %v1205_v43 = vmax.f32 %v1173_v27, 0.0 }
 0x266   : > { %v1206_v44 = vmax.f32 %v1174_v28, 0.0  ;;  %v1207_v45 = vmax.f32 %v1175_v29, 0.0  ;;  %v1208_v46 = vmax.f32 %v1176_v30, 0.0  ;;  %v1209_v47 = vmax.f32 %v1177_v31, 0.0  ;;  %1232 = vst [vmem:[%s1766_s5 + $0x80] sm:$0xff] %v1200_v38  ;;  %1233 = vst [vmem:[%s1766_s5 + $0x88] sm:$0xff] %v1201_v39 }
 0x267   : > { %v1210_v48 = vmax.f32 %v1178_v32, 0.0  ;;  %v1211_v49 = vmax.f32 %v1179_v33, 0.0  ;;  %1234 = vst [vmem:[%s1766_s5 + $0x90] sm:$0xff] %v1202_v40  ;;  %1235 = vst [vmem:[%s1766_s5 + $0x98] sm:$0xff] %v1203_v41  ;;  %v1212_v50 = vmax.f32 %v1180_v34, 0.0  ;;  %v1213_v51 = vmax.f32 %v1181_v35, 0.0 }
 0x268   : > { %v1214_v52 = vmax.f32 %v1182_v36, 0.0  ;;  %v1215_v53 = vmax.f32 %v1183_v37, 0.0  ;;  %1236 = vst [vmem:[%s1766_s5 + $0xa0] sm:$0xff] %v1204_v42  ;;  %1237 = vst [vmem:[%s1766_s5 + $0xa8] sm:$0xff] %v1205_v43 }
 0x269   : > { %1238 = vst [vmem:[%s1766_s5 + $0xb0] sm:$0xff] %v1206_v44  ;;  %1239 = vst [vmem:[%s1766_s5 + $0xb8] sm:$0xff] %v1207_v45 }
 0x26a   : > { %1240 = vst [vmem:[%s1766_s5 + $0xc0] sm:$0xff] %v1208_v46  ;;  %1241 = vst [vmem:[%s1766_s5 + $0xc8] sm:$0xff] %v1209_v47 }
 0x26b   : > { %1242 = vst [vmem:[%s1766_s5 + $0xd0] sm:$0xff] %v1210_v48  ;;  %1243 = vst [vmem:[%s1766_s5 + $0xd8] sm:$0xff] %v1211_v49 }
 0x26c   : > { %1244 = vst [vmem:[%s1766_s5 + $0xe0] sm:$0xff] %v1212_v50  ;;  %1245 = vst [vmem:[%s1766_s5 + $0xe8] sm:$0xff] %v1213_v51 }
 0x26d   : > { %1246 = vst [vmem:[%s1766_s5 + $0xf0] sm:$0xff] %v1214_v52  ;;  %1247 = vst [vmem:[%s1766_s5 + $0xf8] sm:$0xff] %v1215_v53 }
 0x26e PF: > { %s1420_s12 = sshll.u32 %s1621_s13, 12  ;;  %s1268_s25 = sshll.u32 %s1766_s5, 4  ;;  %s1918_s25 = int_to_ptr.vmem [resolvable:$true] %s1268_s25 }
 0x26f   : > { %s1915_s21 = scalar_lea.hbm %s1973_s2, %s1420_s12  ;;  %s1249_s29 = scalar_lea.sflag [#allocation7], %s1755_s22 }
 0x270   : > { %s1537_s27 = scalar_lea.vmem %s1918_s25, 4096  ;;  %s1638_s30 = smov [#allocation8]  }
 0x271   : > { %p1538_p0 = scmp.ne.s32.totalorder %s1918_s25, %s1537_s27  ;;  %s1541_s3 = sshll.u32 %s1638_s30, 4  ;;  %s1542_s3 = int_to_ptr.vmem [resolvable:$false] %s1541_s3 }
 0x272   : > { %s1543_s13 = scalar_lea.vmem %s1542_s3, 8192  ;;  %p1544_p4 = scmp.lt.s32.totalorder %s1918_s25, %s1542_s3 }
 0x273   : > { %p1539_p1 = pnand %p1538_p0, %p1719_p10  ;;  %p1545_p5 = scmp.lt.s32.totalorder %s1543_s13, %s1537_s27 }
 0x275   : > { %p1540_p2 = pneg %p1539_p1  ;;  %p1546_p6 = por %p1545_p5, %p1544_p4 }
 0x277   : > { %p1547_p7 = pnand %p1546_p6, %p1540_p2 }
 0x279   : > { %1550 = shalt.err (!%p1547_p7)
}
 0x27a   : > { %s1551_s4 = scalar_lea.hbm %s1915_s21, 4096  ;;  %s1555_s7 = scalar_lea.hbm %s1973_s2, 8192 }
 0x27b   : > { %p1552_p8 = scmp.ne.s32.totalorder %s1915_s21, %s1551_s4  ;;  %p1556_p13 = scmp.lt.s32.totalorder %s1915_s21, %s1973_s2 }
 0x27c   : > { %p1557_p11 = scmp.lt.s32.totalorder %s1555_s7, %s1551_s4 }
 0x27d   : > { %p1553_p12 = pnand %p1552_p8, %p1719_p10 }
 0x27e   : > { %p1558_p9 = por %p1557_p11, %p1556_p13 }
 0x27f   : > { %p1554_p3 = pneg %p1553_p12 }
 0x281   : > { %p1559_p0 = pnand %p1558_p9, %p1554_p3 }
 0x283   : > { %1562 = shalt.err (!%p1559_p0)
}
 0x284   : > { %s1639_s12 = smov 2048   ;;  %s1640_s17 = smov 128  }
 0x285   : > { %1423 = dma.vmem_to_hbm [thread:$0]  (%p1719_p10), %s1918_s25, 4096, %s1915_s21, %s1249_s29, %s1639_s12, %s1639_s12, %s1640_s17  }
 0x286 PF: > { %p1434_p1 = scmp.ge.s32.totalorder %s1633_s16, 2  ;;  %s1283_s18 = sand.u32 1, %s1605_s9  }
 0x287   : > { %p1979_p2 = scmp.ne.s32.totalorder %s1977_s26, 0  ;;  %s1284_s27 = scalar_lea.sflag [#allocation7], %s1283_s18 }
 0x289   : > { %p1430_p4 = pnand %p1434_p1, %p1979_p2 }
 0x28b   : > { %p1431_p5 = pneg %p1430_p4 }
 0x28d   : > { %1600 = dma.done.wait (%p1431_p5), %s1284_s27, 4096  }
 0x28e   : > { %1602 = vsyncadd (%p1431_p5), %s1284_s27, 4294963200  ;;  %s18_s16 = sadd.s32 1, %s1633_s16   ;;  %s1980_s9 = smov %s1609_s10 }
 0x28f   : > { %p15_p6 = scmp.ge.s32.totalorder %s18_s16, 6   ;;  %s1981_s10 = smov %s1613_s11 }
 0x290   : > { %s1982_s11 = smov %s1732_s28  ;;  %s1983_s12 = smov %s1625_s14 }
 0x291   : > { %s1984_s13 = smov %s1629_s15  ;;  %s1985_s14 = smov %s1988_s19 }
 0x292   : > { %s1986_s15 = smov %s1992_s20  ;;  %17 = sbr.rel (!%p15_p6) target bundleno = 7 (0x7), region = 94 }
 0x297   :  { %1289 = vsyncpa [#allocation6], 1 }
 0x298   :  { %1291 = vsyncpa [#allocation6 + $0x1], 1 }
 0x299   :  { %1292 = vsyncpa [#allocation7], 1 }
 0x29a   :  { %1294 = vsyncpa [#allocation7 + $0x1], 1 }

</bundles_post_ra>
